<compile_context>
chip_gen: v6e
topology: v6e:2x2x1
jax: 0.10.0
libtpu: 0.0.40
codegen_flags: <defaults>
</compile_context>

<pallas_src>
import functools

import jax
import jax.numpy as jnp
from jax.experimental import pallas as pl
from jax.experimental.pallas import tpu as pltpu

_EPS = 1e-5


def _round_up(v, m):
    return (v + m - 1) // m * m


# ------------------------------ Pallas kernel ------------------------------ #

def _bottleneck_kernel(x_ref, m_ref, w1_ref, b1_ref, w2_ref, b2_ref,
                       w3_ref, b3_ref, o_ref, *scratch,
                       stride, cin, c1, n_ph, Wq, mo, has_proj, stack_taps):
    """Fused Bottleneck forward for one batch element.

    Activations are (C, M) matrices with M = flattened, zero-padded spatial
    positions on the lane axis (M rounded up to a multiple of 128).  Each
    polyphase component of out1 is stored in a VMEM scratch buffer with a
    zero border so every 3x3 tap is a contiguous slice at a static offset
    (junk "wrap" columns are carried along and cropped at the network output).
    """
    out1_bufs = scratch[:n_ph]
    idx = n_ph
    if stack_taps:
        a_stack = scratch[idx]
        idx += 1
    if has_proj:
        cat_buf = scratch[idx]
        idx += 1

    # ---- conv1 (1x1) + bn1 + relu, per polyphase component, kept in VMEM ----
    for p in range(n_ph):
        xph = x_ref[0, p * cin:(p + 1) * cin, :]                  # (Cin, Mq) bf16
        h = jnp.dot(w1_ref[...], xph, preferred_element_type=jnp.float32)
        h = jnp.maximum(h + b1_ref[...], 0.0) * m_ref[p:p + 1, :]
        out1_bufs[p][...] = h.astype(out1_bufs[p].dtype)

    # ---- conv2 (3x3, stride, pad=1) + bn2 + relu ----
    taps = []
    for ty in range(3):
        py = (ty - 1) % stride
        qy = (ty - 1 - py) // stride
        for tx in range(3):
            px = (tx - 1) % stride
            qx = (tx - 1 - px) // stride
            p = py * stride + px
            off = (qy + 1) * Wq + (qx + 1)                        # static offset
            taps.append((p, off))

    if stack_taps:
        # Stack the 9 shifted slices along the contraction dim -> one MXU pass
        # with K = 9*C1 (subsumes the per-tap realignment copies).
        for t, (p, off) in enumerate(taps):
            a_stack[t * c1:(t + 1) * c1, :] = out1_bufs[p][:, off:off + mo]
        acc2 = jnp.dot(w2_ref[...], a_stack[...],
                       preferred_element_type=jnp.float32)
    else:
        acc2 = None
        for t, (p, off) in enumerate(taps):
            a = out1_bufs[p][:, off:off + mo]                     # (C1, Mo) bf16
            d = jnp.dot(w2_ref[t], a, preferred_element_type=jnp.float32)
            acc2 = d if acc2 is None else acc2 + d
    out2 = jnp.maximum(acc2 + b2_ref[...], 0.0)                   # (C1, Mo) f32

    # ---- conv3 (1x1) + bn3 + shortcut + final relu ----
    # shortcut input = x at the stride-subsampled positions = polyphase (0,0),
    # read at the "center" offset of the padded-flat layout.
    sc_in = x_ref[0, :cin, Wq + 1:Wq + 1 + mo]                    # (Cin, Mo) bf16
    if has_proj:
        # Fused [w3 | ws] @ [out2 ; sc_in]: one full-K MXU pass, one bias add.
        cat_buf[:c1, :] = out2.astype(cat_buf.dtype)
        cat_buf[c1:, :] = sc_in
        acc3 = jnp.dot(w3_ref[...], cat_buf[...],
                       preferred_element_type=jnp.float32)
        acc3 = acc3 + b3_ref[...]
    else:
        acc3 = jnp.dot(w3_ref[...], out2.astype(w3_ref.dtype),
                       preferred_element_type=jnp.float32)
        acc3 = acc3 + b3_ref[...] + sc_in.astype(jnp.float32)
    o_ref[0] = jnp.maximum(acc3, 0.0).astype(o_ref.dtype)


# ------------------------------ JAX-side glue ------------------------------ #

def _bn_fold(bn_params):
    gamma, beta, mean, var = bn_params
    scale = gamma / jnp.sqrt(var + _EPS)
    bias = beta - mean * scale
    return scale, bias


def prepare_bottleneck_params(params, *, matmul_dtype=jnp.bfloat16,
                              tap_stack_max_c1=128):
    """Fold BN into conv weights and pre-reshape for the kernel (done once)."""
    expansion = 4
    C1, Cin = params['w1'].shape[0], params['w1'].shape[1]
    C3 = expansion * C1
    has_proj = params['ws'] is not None
    # On v5e the MXU K dim is 128, so tap-stacking only helps when C1 < 128;
    # it also helps on v6e/v7x (K=256) for all ResNet widths below 256.
    stack_taps = C1 < tap_stack_max_c1

    s1, b1 = _bn_fold(params['bn1'])
    s2, b2 = _bn_fold(params['bn2'])
    s3, b3 = _bn_fold(params['bn3'])

    w1f = (params['w1'].reshape(C1, Cin) * s1[:, None]).astype(matmul_dtype)
    w2f9 = (jnp.transpose(params['w2'], (2, 3, 0, 1)).reshape(9, C1, C1)
            * s2[None, :, None]).astype(matmul_dtype)
    w3f = (params['w3'].reshape(C3, C1) * s3[:, None]).astype(matmul_dtype)
    b1c = b1.reshape(C1, 1).astype(jnp.float32)
    b2c = b2.reshape(C1, 1).astype(jnp.float32)
    b3c = b3.reshape(C3, 1).astype(jnp.float32)

    w2p = (jnp.transpose(w2f9, (1, 0, 2)).reshape(C1, 9 * C1)
           if stack_taps else w2f9)

    if has_proj:
        ss_, bs_ = _bn_fold(params['bns'])
        wsf = (params['ws'].reshape(C3, Cin) * ss_[:, None]).astype(matmul_dtype)
        w3p = jnp.concatenate([w3f, wsf], axis=1)                 # (C3, C1+Cin)
        b3p = (b3c + bs_.reshape(C3, 1)).astype(jnp.float32)
    else:
        w3p, b3p = w3f, b3c

    return dict(w1=w1f, b1=b1c, w2=w2p, b2=b2c, w3=w3p, b3=b3p,
                cin=Cin, c1=C1, c3=C3, has_proj=has_proj,
                stack_taps=stack_taps, dtype=matmul_dtype)


def _vmem_limit_bytes():
    """Per-generation VMEM budget (<= ~56 MiB on v7x's 64 MiB core)."""
    try:
        cap = int(pltpu.get_tpu_info().vmem_capacity_bytes)
        return min(112 * 1024 * 1024, cap - 8 * 1024 * 1024)
    except Exception:
        return 48 * 1024 * 1024   # safe on every generation


def bottleneck_forward_padded(x_nchw, prep, stride, *, out_dtype=jnp.bfloat16):
    """Fused Bottleneck forward. Returns the padded-flat (N, C3, Mo) output
    (the inter-block interface); crop with `crop_padded_output` at the end
    of the network."""
    N, Cin, H, W = x_nchw.shape
    assert Cin == prep['cin']
    s = int(stride)
    C1, C3 = prep['c1'], prep['c3']
    dtype = prep['dtype']
    has_proj, stack_taps = prep['has_proj'], prep['stack_taps']

    Ho = (H + 2 - 3) // s + 1
    Wo = (W + 2 - 3) // s + 1
    Hq, Wq = Ho + 2, Wo + 2
    Mo = _round_up(Ho * Wq, 128)              # lane-dense flat output length
    Mq = _round_up(2 * Wq + 2 + Mo, 128)      # keeps every tap slice in range
    n_ph = s * s

    # ---- polyphase split + zero-pad + flatten of x (replaces im2col) ----
    xph_list, msk_list = [], []
    for a in range(s):
        for b in range(s):
            xs = x_nchw[:, :, a::s, b::s]
            Hph, Wph = xs.shape[2], xs.shape[3]
            xs = jnp.pad(xs, ((0, 0), (0, 0),
                              (1, Hq - 1 - Hph), (1, Wq - 1 - Wph)))
            xs = xs.reshape(N, Cin, Hq * Wq)
            xs = jnp.pad(xs, ((0, 0), (0, 0), (0, Mq - Hq * Wq)))
            xph_list.append(xs)
            m = jnp.zeros((Hq, Wq), jnp.float32)
            m = m.at[1:1 + Hph, 1:1 + Wph].set(1.0)
            msk_list.append(jnp.pad(m.reshape(-1), (0, Mq - Hq * Wq)))
    # (N, n_ph*Cin, Mq): phase-major channel stacking, bf16
    x_ph = jnp.concatenate(xph_list, axis=1).astype(dtype)
    masks = jnp.stack(msk_list, axis=0)                           # (n_ph, Mq)

    def const_spec(shape):
        # Grid-invariant operand: fetched once, single-buffered.
        zeros = (0,) * len(shape)
        return pl.BlockSpec(shape, lambda n: zeros,
                            pipeline_mode=pl.Buffered(1))

    in_specs = [
        pl.BlockSpec((1, n_ph * Cin, Mq), lambda n: (n, 0, 0)),   # per-batch x
        const_spec((n_ph, Mq)),                                   # border masks
        const_spec(prep['w1'].shape), const_spec((C1, 1)),        # conv1
        const_spec(prep['w2'].shape), const_spec((C1, 1)),        # conv2
        const_spec(prep['w3'].shape), const_spec((C3, 1)),        # conv3(+proj)
    ]
    args = [x_ph, masks, prep['w1'], prep['b1'], prep['w2'], prep['b2'],
            prep['w3'], prep['b3']]

    scratch = [pltpu.VMEM((C1, Mq), dtype)] * n_ph
    if stack_taps:
        scratch.append(pltpu.VMEM((9 * C1, Mo), dtype))
    if has_proj:
        scratch.append(pltpu.VMEM((C1 + Cin, Mo), dtype))

    kernel = functools.partial(
        _bottleneck_kernel, stride=s, cin=Cin, c1=C1, n_ph=n_ph,
        Wq=Wq, mo=Mo, has_proj=has_proj, stack_taps=stack_taps)

    out_flat = pl.pallas_call(
        kernel,
        out_shape=jax.ShapeDtypeStruct((N, C3, Mo), out_dtype),
        grid=(N,),
        in_specs=in_specs,
        out_specs=pl.BlockSpec((1, C3, Mo), lambda n: (n, 0, 0)),
        scratch_shapes=scratch,
        compiler_params=pltpu.CompilerParams(
            dimension_semantics=("parallel",),
            vmem_limit_bytes=_vmem_limit_bytes()),
    )(*args)
    return out_flat


def crop_padded_output(out_flat, H, W, stride):
    """Convert the padded-flat kernel output back to NCHW (do once, at the
    network output)."""
    s = int(stride)
    Ho = (H + 2 - 3) // s + 1
    Wo = (W + 2 - 3) // s + 1
    Wq = Wo + 2
    N, C3, _ = out_flat.shape
    out = out_flat[:, :, :Ho * Wq].reshape(N, C3, Ho, Wq)
    return out[:, :, :, :Wo]


def bottleneck_forward(x_nchw, prep, stride, *, out_dtype=jnp.bfloat16):
    out_flat = bottleneck_forward_padded(x_nchw, prep, stride,
                                         out_dtype=out_dtype)
    return crop_padded_output(out_flat, x_nchw.shape[2], x_nchw.shape[3],
                              stride)


# ----------------------- deterministic parameter init ---------------------- #

def init_bottleneck_params(key, in_channel, channel, stride):
    expansion = 4
    keys = jax.random.split(key, 8)

    def conv_w(k, cout, cin, kh, kw):
        fan_in = cin * kh * kw
        return (jax.random.normal(k, (cout, cin, kh, kw), jnp.float32)
                / jnp.sqrt(jnp.float32(fan_in)))

    def bn_p(k, c):
        k1, k2, k3, k4 = jax.random.split(k, 4)
        gamma = 1.0 + 0.1 * jax.random.normal(k1, (c,), jnp.float32)
        beta = 0.1 * jax.random.normal(k2, (c,), jnp.float32)
        mean = 0.05 * jax.random.normal(k3, (c,), jnp.float32)
        var = jax.random.uniform(k4, (c,), jnp.float32, minval=0.5, maxval=1.5)
        return (gamma, beta, mean, var)

    params = {
        'w1': conv_w(keys[0], channel, in_channel, 1, 1),
        'bn1': bn_p(keys[1], channel),
        'w2': conv_w(keys[2], channel, channel, 3, 3),
        'bn2': bn_p(keys[3], channel),
        'w3': conv_w(keys[4], expansion * channel, channel, 1, 1),
        'bn3': bn_p(keys[5], expansion * channel),
        'ws': None,
        'bns': None,
    }
    if stride != 1 or in_channel != expansion * channel:
        params['ws'] = conv_w(keys[6], expansion * channel, in_channel, 1, 1)
        params['bns'] = bn_p(keys[7], expansion * channel)
    return params


# ----------------------------- pure-JAX reference --------------------------- #

def bottleneck_reference(x, params, stride):
    def conv(x, w, s=1, padding='VALID'):
        return jax.lax.conv_general_dilated(
            x, w, (s, s), padding,
            dimension_numbers=('NCHW', 'OIHW', 'NCHW'))

    def bn(x, p):
        gamma, beta, mean, var = p
        sc = gamma / jnp.sqrt(var + _EPS)
        bi = beta - mean * sc
        return x * sc[None, :, None, None] + bi[None, :, None, None]

    out = jax.nn.relu(bn(conv(x, params['w1']), params['bn1']))
    out = jax.nn.relu(bn(conv(out, params['w2'], stride, ((1, 1), (1, 1))),
                         params['bn2']))
    out = bn(conv(out, params['w3']), params['bn3'])
    if params['ws'] is not None:
        sc = bn(conv(x, params['ws'], stride), params['bns'])
    else:
        sc = x
    return jax.nn.relu(out + sc)


# ----------------------------------- main ----------------------------------- #

def _check(out, ref):
    # bf16 matmul inputs + bf16 output with f32 accumulation -> relaxed tol.
    out = out.astype(jnp.float32)
    max_err = float(jnp.max(jnp.abs(out - ref)))
    mean_err = float(jnp.mean(jnp.abs(out - ref)))
    assert max_err < 2e-1 and mean_err < 3e-2, (max_err, mean_err)


if __name__ == "__main__":
    key = jax.random.PRNGKey(0)
    kx1, kp1, kx2, kp2 = jax.random.split(key, 4)

    # Case 1: projection shortcut (stride 2, channel change), stacked-tap path.
    in_channel, channel, stride = 32, 16, 2
    x1 = jax.random.normal(kx1, (2, in_channel, 16, 16), jnp.float32)  # NCHW
    p1 = init_bottleneck_params(kp1, in_channel, channel, stride)
    prep1 = prepare_bottleneck_params(p1)
    out1 = jax.block_until_ready(bottleneck_forward(x1, prep1, stride))
    ref1 = bottleneck_reference(x1, p1, stride)
    assert out1.shape == ref1.shape == (2, 4 * channel, 8, 8), (out1.shape,)
    _check(out1, ref1)

    # Case 2: identity shortcut (stride 1, in_channel == 4 * channel).
    in_channel2, channel2, stride2 = 64, 16, 1
    x2 = jax.random.normal(kx2, (2, in_channel2, 8, 8), jnp.float32)   # NCHW
    p2 = init_bottleneck_params(kp2, in_channel2, channel2, stride2)
    prep2 = prepare_bottleneck_params(p2)
    out2 = jax.block_until_ready(bottleneck_forward(x2, prep2, stride2))
    ref2 = bottleneck_reference(x2, p2, stride2)
    assert out2.shape == ref2.shape == (2, 4 * channel2, 8, 8), (out2.shape,)
    _check(out2, ref2)

    # Case 3: exercise the non-stacked conv2 path (used when C1 >= 128).
    prep1u = prepare_bottleneck_params(p1, tap_stack_max_c1=1)
    out3 = jax.block_until_ready(bottleneck_forward(x1, prep1u, stride))
    _check(out3, ref1)

    print("KERNEL_OK")
</pallas_src>

<mosaic_0001>
module attributes {stable_mosaic.version = 11 : i64} {
  func.func @_bottleneck_kernel(%arg0: i32, %arg1: memref<1x128x256xbf16, #tpu.memory_space<vmem>>, %arg2: memref<4x256xf32, #tpu.memory_space<vmem>>, %arg3: memref<16x32xbf16, #tpu.memory_space<vmem>>, %arg4: memref<16x1xf32, #tpu.memory_space<vmem>>, %arg5: memref<16x144xbf16, #tpu.memory_space<vmem>>, %arg6: memref<16x1xf32, #tpu.memory_space<vmem>>, %arg7: memref<64x48xbf16, #tpu.memory_space<vmem>>, %arg8: memref<64x1xf32, #tpu.memory_space<vmem>>, %arg9: memref<1x64x128xbf16, #tpu.memory_space<vmem>>, %arg10: memref<16x256xbf16, #tpu.memory_space<vmem>>, %arg11: memref<16x256xbf16, #tpu.memory_space<vmem>>, %arg12: memref<16x256xbf16, #tpu.memory_space<vmem>>, %arg13: memref<16x256xbf16, #tpu.memory_space<vmem>>, %arg14: memref<144x128xbf16, #tpu.memory_space<vmem>>, %arg15: memref<48x128xbf16, #tpu.memory_space<vmem>>) attributes {dimension_semantics = [#tpu.dimension_semantics<parallel>], iteration_bounds = array<i64: 2>, scalar_prefetch = 0 : i64, scratch_operands = 6 : i64, tpu.core_type = #tpu.core_type<tc>, window_params = [{transform_indices = @transform_0, window_bounds = array<i64: 1, 128, 256>}, {pipeline_mode = #tpu.pipeline_mode<synchronous>, transform_indices = @transform_1, window_bounds = array<i64: 4, 256>}, {pipeline_mode = #tpu.pipeline_mode<synchronous>, transform_indices = @transform_2, window_bounds = array<i64: 16, 32>}, {pipeline_mode = #tpu.pipeline_mode<synchronous>, transform_indices = @transform_3, window_bounds = array<i64: 16, 1>}, {pipeline_mode = #tpu.pipeline_mode<synchronous>, transform_indices = @transform_4, window_bounds = array<i64: 16, 144>}, {pipeline_mode = #tpu.pipeline_mode<synchronous>, transform_indices = @transform_5, window_bounds = array<i64: 16, 1>}, {pipeline_mode = #tpu.pipeline_mode<synchronous>, transform_indices = @transform_6, window_bounds = array<i64: 64, 48>}, {pipeline_mode = #tpu.pipeline_mode<synchronous>, transform_indices = @transform_7, window_bounds = array<i64: 64, 1>}, {transform_indices = @transform_8, window_bounds = array<i64: 1, 64, 128>}]} {
    %c0 = arith.constant 0 : index
    %c0_0 = arith.constant 0 : index
    %c0_1 = arith.constant 0 : index
    %0 = vector.load %arg1[%c0, %c0_0, %c0_1] : memref<1x128x256xbf16, #tpu.memory_space<vmem>>, vector<1x32x256xbf16>
    %1 = vector.shape_cast %0 : vector<1x32x256xbf16> to vector<32x256xbf16>
    %c0_2 = arith.constant 0 : index
    %c0_3 = arith.constant 0 : index
    %2 = vector.load %arg3[%c0_2, %c0_3] : memref<16x32xbf16, #tpu.memory_space<vmem>>, vector<16x32xbf16>
    %cst = arith.constant dense<0.000000e+00> : vector<16x256xf32>
    %3 = tpu.matmul %2, %1, %cst {dimension_numbers = #tpu.dot_dimension_numbers<[1], [0], [0], [1], [0, 0, 1, 1], [], []>} : vector<16x32xbf16>, vector<32x256xbf16>, vector<16x256xf32> -> vector<16x256xf32>
    %c0_4 = arith.constant 0 : index
    %c0_5 = arith.constant 0 : index
    %4 = vector.load %arg4[%c0_4, %c0_5] : memref<16x1xf32, #tpu.memory_space<vmem>>, vector<16x1xf32>
    %5 = vector.broadcast %4 : vector<16x1xf32> to vector<16x256xf32>
    %6 = arith.addf %3, %5 : vector<16x256xf32>
    %cst_6 = arith.constant 0.000000e+00 : f32
    %7 = vector.broadcast %cst_6 : f32 to vector<16x256xf32>
    %8 = arith.maximumf %6, %7 : vector<16x256xf32>
    %c0_7 = arith.constant 0 : index
    %c0_8 = arith.constant 0 : index
    %9 = vector.load %arg2[%c0_7, %c0_8] : memref<4x256xf32, #tpu.memory_space<vmem>>, vector<1x256xf32>
    %10 = vector.broadcast %9 : vector<1x256xf32> to vector<16x256xf32>
    %11 = arith.mulf %8, %10 : vector<16x256xf32>
    %12 = arith.truncf %11 : vector<16x256xf32> to vector<16x256xbf16>
    %c0_9 = arith.constant 0 : index
    %c0_10 = arith.constant 0 : index
    %13 = vector.load %arg10[%c0_9, %c0_10] : memref<16x256xbf16, #tpu.memory_space<vmem>>, vector<16x256xbf16>
    tpu.vector_store %arg10[%c0_9, %c0_10], %12 {strides = array<i32>} : memref<16x256xbf16, #tpu.memory_space<vmem>>, vector<16x256xbf16>,
    %c0_11 = arith.constant 0 : index
    %c32 = arith.constant 32 : index
    %c0_12 = arith.constant 0 : index
    %14 = vector.load %arg1[%c0_11, %c32, %c0_12] : memref<1x128x256xbf16, #tpu.memory_space<vmem>>, vector<1x32x256xbf16>
    %15 = vector.shape_cast %14 : vector<1x32x256xbf16> to vector<32x256xbf16>
    %c0_13 = arith.constant 0 : index
    %c0_14 = arith.constant 0 : index
    %16 = vector.load %arg3[%c0_13, %c0_14] : memref<16x32xbf16, #tpu.memory_space<vmem>>, vector<16x32xbf16>
    %cst_15 = arith.constant dense<0.000000e+00> : vector<16x256xf32>
    %17 = tpu.matmul %16, %15, %cst_15 {dimension_numbers = #tpu.dot_dimension_numbers<[1], [0], [0], [1], [0, 0, 1, 1], [], []>} : vector<16x32xbf16>, vector<32x256xbf16>, vector<16x256xf32> -> vector<16x256xf32>
    %c0_16 = arith.constant 0 : index
    %c0_17 = arith.constant 0 : index
    %18 = vector.load %arg4[%c0_16, %c0_17] : memref<16x1xf32, #tpu.memory_space<vmem>>, vector<16x1xf32>
    %19 = vector.broadcast %18 : vector<16x1xf32> to vector<16x256xf32>
    %20 = arith.addf %17, %19 : vector<16x256xf32>
    %cst_18 = arith.constant 0.000000e+00 : f32
    %21 = vector.broadcast %cst_18 : f32 to vector<16x256xf32>
    %22 = arith.maximumf %20, %21 : vector<16x256xf32>
    %c1 = arith.constant 1 : index
    %c0_19 = arith.constant 0 : index
    %23 = vector.load %arg2[%c1, %c0_19] : memref<4x256xf32, #tpu.memory_space<vmem>>, vector<1x256xf32>
    %24 = vector.broadcast %23 : vector<1x256xf32> to vector<16x256xf32>
    %25 = arith.mulf %22, %24 : vector<16x256xf32>
    %26 = arith.truncf %25 : vector<16x256xf32> to vector<16x256xbf16>
    %c0_20 = arith.constant 0 : index
    %c0_21 = arith.constant 0 : index
    %27 = vector.load %arg11[%c0_20, %c0_21] : memref<16x256xbf16, #tpu.memory_space<vmem>>, vector<16x256xbf16>
    tpu.vector_store %arg11[%c0_20, %c0_21], %26 {strides = array<i32>} : memref<16x256xbf16, #tpu.memory_space<vmem>>, vector<16x256xbf16>,
    %c0_22 = arith.constant 0 : index
    %c64 = arith.constant 64 : index
    %c0_23 = arith.constant 0 : index
    %28 = vector.load %arg1[%c0_22, %c64, %c0_23] : memref<1x128x256xbf16, #tpu.memory_space<vmem>>, vector<1x32x256xbf16>
    %29 = vector.shape_cast %28 : vector<1x32x256xbf16> to vector<32x256xbf16>
    %c0_24 = arith.constant 0 : index
    %c0_25 = arith.constant 0 : index
    %30 = vector.load %arg3[%c0_24, %c0_25] : memref<16x32xbf16, #tpu.memory_space<vmem>>, vector<16x32xbf16>
    %cst_26 = arith.constant dense<0.000000e+00> : vector<16x256xf32>
    %31 = tpu.matmul %30, %29, %cst_26 {dimension_numbers = #tpu.dot_dimension_numbers<[1], [0], [0], [1], [0, 0, 1, 1], [], []>} : vector<16x32xbf16>, vector<32x256xbf16>, vector<16x256xf32> -> vector<16x256xf32>
    %c0_27 = arith.constant 0 : index
    %c0_28 = arith.constant 0 : index
    %32 = vector.load %arg4[%c0_27, %c0_28] : memref<16x1xf32, #tpu.memory_space<vmem>>, vector<16x1xf32>
    %33 = vector.broadcast %32 : vector<16x1xf32> to vector<16x256xf32>
    %34 = arith.addf %31, %33 : vector<16x256xf32>
    %cst_29 = arith.constant 0.000000e+00 : f32
    %35 = vector.broadcast %cst_29 : f32 to vector<16x256xf32>
    %36 = arith.maximumf %34, %35 : vector<16x256xf32>
    %c2 = arith.constant 2 : index
    %c0_30 = arith.constant 0 : index
    %37 = vector.load %arg2[%c2, %c0_30] : memref<4x256xf32, #tpu.memory_space<vmem>>, vector<1x256xf32>
    %38 = vector.broadcast %37 : vector<1x256xf32> to vector<16x256xf32>
    %39 = arith.mulf %36, %38 : vector<16x256xf32>
    %40 = arith.truncf %39 : vector<16x256xf32> to vector<16x256xbf16>
    %c0_31 = arith.constant 0 : index
    %c0_32 = arith.constant 0 : index
    %41 = vector.load %arg12[%c0_31, %c0_32] : memref<16x256xbf16, #tpu.memory_space<vmem>>, vector<16x256xbf16>
    tpu.vector_store %arg12[%c0_31, %c0_32], %40 {strides = array<i32>} : memref<16x256xbf16, #tpu.memory_space<vmem>>, vector<16x256xbf16>,
    %c0_33 = arith.constant 0 : index
    %c96 = arith.constant 96 : index
    %c0_34 = arith.constant 0 : index
    %42 = vector.load %arg1[%c0_33, %c96, %c0_34] : memref<1x128x256xbf16, #tpu.memory_space<vmem>>, vector<1x32x256xbf16>
    %43 = vector.shape_cast %42 : vector<1x32x256xbf16> to vector<32x256xbf16>
    %c0_35 = arith.constant 0 : index
    %c0_36 = arith.constant 0 : index
    %44 = vector.load %arg3[%c0_35, %c0_36] : memref<16x32xbf16, #tpu.memory_space<vmem>>, vector<16x32xbf16>
    %cst_37 = arith.constant dense<0.000000e+00> : vector<16x256xf32>
    %45 = tpu.matmul %44, %43, %cst_37 {dimension_numbers = #tpu.dot_dimension_numbers<[1], [0], [0], [1], [0, 0, 1, 1], [], []>} : vector<16x32xbf16>, vector<32x256xbf16>, vector<16x256xf32> -> vector<16x256xf32>
    %c0_38 = arith.constant 0 : index
    %c0_39 = arith.constant 0 : index
    %46 = vector.load %arg4[%c0_38, %c0_39] : memref<16x1xf32, #tpu.memory_space<vmem>>, vector<16x1xf32>
    %47 = vector.broadcast %46 : vector<16x1xf32> to vector<16x256xf32>
    %48 = arith.addf %45, %47 : vector<16x256xf32>
    %cst_40 = arith.constant 0.000000e+00 : f32
    %49 = vector.broadcast %cst_40 : f32 to vector<16x256xf32>
    %50 = arith.maximumf %48, %49 : vector<16x256xf32>
    %c3 = arith.constant 3 : index
    %c0_41 = arith.constant 0 : index
    %51 = vector.load %arg2[%c3, %c0_41] : memref<4x256xf32, #tpu.memory_space<vmem>>, vector<1x256xf32>
    %52 = vector.broadcast %51 : vector<1x256xf32> to vector<16x256xf32>
    %53 = arith.mulf %50, %52 : vector<16x256xf32>
    %54 = arith.truncf %53 : vector<16x256xf32> to vector<16x256xbf16>
    %c0_42 = arith.constant 0 : index
    %c0_43 = arith.constant 0 : index
    %55 = vector.load %arg13[%c0_42, %c0_43] : memref<16x256xbf16, #tpu.memory_space<vmem>>, vector<16x256xbf16>
    tpu.vector_store %arg13[%c0_42, %c0_43], %54 {strides = array<i32>} : memref<16x256xbf16, #tpu.memory_space<vmem>>, vector<16x256xbf16>,
    %c0_44 = arith.constant 0 : index
    %c0_45 = arith.constant 0 : index
    %56 = vector.load %arg13[%c0_44, %c0_45] : memref<16x256xbf16, #tpu.memory_space<vmem>>, vector<16x128xbf16>
    %c0_46 = arith.constant 0 : index
    %c0_47 = arith.constant 0 : index
    %57 = vector.load %arg14[%c0_46, %c0_47] : memref<144x128xbf16, #tpu.memory_space<vmem>>, vector<16x128xbf16>
    tpu.vector_store %arg14[%c0_46, %c0_47], %56 {strides = array<i32>} : memref<144x128xbf16, #tpu.memory_space<vmem>>, vector<16x128xbf16>,
    %c0_48 = arith.constant 0 : index
    %c1_49 = arith.constant 1 : index
    %58 = vector.load %arg12[%c0_48, %c1_49] : memref<16x256xbf16, #tpu.memory_space<vmem>>, vector<16x128xbf16>
    %c16 = arith.constant 16 : index
    %c0_50 = arith.constant 0 : index
    %59 = vector.load %arg14[%c16, %c0_50] : memref<144x128xbf16, #tpu.memory_space<vmem>>, vector<16x128xbf16>
    tpu.vector_store %arg14[%c16, %c0_50], %58 {strides = array<i32>} : memref<144x128xbf16, #tpu.memory_space<vmem>>, vector<16x128xbf16>,
    %c0_51 = arith.constant 0 : index
    %c1_52 = arith.constant 1 : index
    %60 = vector.load %arg13[%c0_51, %c1_52] : memref<16x256xbf16, #tpu.memory_space<vmem>>, vector<16x128xbf16>
    %c32_53 = arith.constant 32 : index
    %c0_54 = arith.constant 0 : index
    %61 = vector.load %arg14[%c32_53, %c0_54] : memref<144x128xbf16, #tpu.memory_space<vmem>>, vector<16x128xbf16>
    tpu.vector_store %arg14[%c32_53, %c0_54], %60 {strides = array<i32>} : memref<144x128xbf16, #tpu.memory_space<vmem>>, vector<16x128xbf16>,
    %c0_55 = arith.constant 0 : index
    %c10 = arith.constant 10 : index
    %62 = vector.load %arg11[%c0_55, %c10] : memref<16x256xbf16, #tpu.memory_space<vmem>>, vector<16x128xbf16>
    %c48 = arith.constant 48 : index
    %c0_56 = arith.constant 0 : index
    %63 = vector.load %arg14[%c48, %c0_56] : memref<144x128xbf16, #tpu.memory_space<vmem>>, vector<16x128xbf16>
    tpu.vector_store %arg14[%c48, %c0_56], %62 {strides = array<i32>} : memref<144x128xbf16, #tpu.memory_space<vmem>>, vector<16x128xbf16>,
    %c0_57 = arith.constant 0 : index
    %c11 = arith.constant 11 : index
    %64 = vector.load %arg10[%c0_57, %c11] : memref<16x256xbf16, #tpu.memory_space<vmem>>, vector<16x128xbf16>
    %c64_58 = arith.constant 64 : index
    %c0_59 = arith.constant 0 : index
    %65 = vector.load %arg14[%c64_58, %c0_59] : memref<144x128xbf16, #tpu.memory_space<vmem>>, vector<16x128xbf16>
    tpu.vector_store %arg14[%c64_58, %c0_59], %64 {strides = array<i32>} : memref<144x128xbf16, #tpu.memory_space<vmem>>, vector<16x128xbf16>,
    %c0_60 = arith.constant 0 : index
    %c11_61 = arith.constant 11 : index
    %66 = vector.load %arg11[%c0_60, %c11_61] : memref<16x256xbf16, #tpu.memory_space<vmem>>, vector<16x128xbf16>
    %c80 = arith.constant 80 : index
    %c0_62 = arith.constant 0 : index
    %67 = vector.load %arg14[%c80, %c0_62] : memref<144x128xbf16, #tpu.memory_space<vmem>>, vector<16x128xbf16>
    tpu.vector_store %arg14[%c80, %c0_62], %66 {strides = array<i32>} : memref<144x128xbf16, #tpu.memory_space<vmem>>, vector<16x128xbf16>,
    %c0_63 = arith.constant 0 : index
    %c10_64 = arith.constant 10 : index
    %68 = vector.load %arg13[%c0_63, %c10_64] : memref<16x256xbf16, #tpu.memory_space<vmem>>, vector<16x128xbf16>
    %c96_65 = arith.constant 96 : index
    %c0_66 = arith.constant 0 : index
    %69 = vector.load %arg14[%c96_65, %c0_66] : memref<144x128xbf16, #tpu.memory_space<vmem>>, vector<16x128xbf16>
    tpu.vector_store %arg14[%c96_65, %c0_66], %68 {strides = array<i32>} : memref<144x128xbf16, #tpu.memory_space<vmem>>, vector<16x128xbf16>,
    %c0_67 = arith.constant 0 : index
    %c11_68 = arith.constant 11 : index
    %70 = vector.load %arg12[%c0_67, %c11_68] : memref<16x256xbf16, #tpu.memory_space<vmem>>, vector<16x128xbf16>
    %c112 = arith.constant 112 : index
    %c0_69 = arith.constant 0 : index
    %71 = vector.load %arg14[%c112, %c0_69] : memref<144x128xbf16, #tpu.memory_space<vmem>>, vector<16x128xbf16>
    tpu.vector_store %arg14[%c112, %c0_69], %70 {strides = array<i32>} : memref<144x128xbf16, #tpu.memory_space<vmem>>, vector<16x128xbf16>,
    %c0_70 = arith.constant 0 : index
    %c11_71 = arith.constant 11 : index
    %72 = vector.load %arg13[%c0_70, %c11_71] : memref<16x256xbf16, #tpu.memory_space<vmem>>, vector<16x128xbf16>
    %c128 = arith.constant 128 : index
    %c0_72 = arith.constant 0 : index
    %73 = vector.load %arg14[%c128, %c0_72] : memref<144x128xbf16, #tpu.memory_space<vmem>>, vector<16x128xbf16>
    tpu.vector_store %arg14[%c128, %c0_72], %72 {strides = array<i32>} : memref<144x128xbf16, #tpu.memory_space<vmem>>, vector<16x128xbf16>,
    %c0_73 = arith.constant 0 : index
    %c0_74 = arith.constant 0 : index
    %74 = vector.load %arg5[%c0_73, %c0_74] : memref<16x144xbf16, #tpu.memory_space<vmem>>, vector<16x144xbf16>
    %c0_75 = arith.constant 0 : index
    %c0_76 = arith.constant 0 : index
    %75 = vector.load %arg14[%c0_75, %c0_76] : memref<144x128xbf16, #tpu.memory_space<vmem>>, vector<144x128xbf16>
    %cst_77 = arith.constant dense<0.000000e+00> : vector<16x128xf32>
    %76 = tpu.matmul %74, %75, %cst_77 {dimension_numbers = #tpu.dot_dimension_numbers<[1], [0], [0], [1], [0, 0, 1, 1], [], []>} : vector<16x144xbf16>, vector<144x128xbf16>, vector<16x128xf32> -> vector<16x128xf32>
    %c0_78 = arith.constant 0 : index
    %c0_79 = arith.constant 0 : index
    %77 = vector.load %arg6[%c0_78, %c0_79] : memref<16x1xf32, #tpu.memory_space<vmem>>, vector<16x1xf32>
    %78 = vector.broadcast %77 : vector<16x1xf32> to vector<16x128xf32>
    %79 = arith.addf %76, %78 : vector<16x128xf32>
    %cst_80 = arith.constant 0.000000e+00 : f32
    %80 = vector.broadcast %cst_80 : f32 to vector<16x128xf32>
    %81 = arith.maximumf %79, %80 : vector<16x128xf32>
    %c0_81 = arith.constant 0 : index
    %c0_82 = arith.constant 0 : index
    %c11_83 = arith.constant 11 : index
    %82 = vector.load %arg1[%c0_81, %c0_82, %c11_83] : memref<1x128x256xbf16, #tpu.memory_space<vmem>>, vector<1x32x128xbf16>
    %83 = vector.shape_cast %82 : vector<1x32x128xbf16> to vector<32x128xbf16>
    %84 = arith.truncf %81 : vector<16x128xf32> to vector<16x128xbf16>
    %c0_84 = arith.constant 0 : index
    %c0_85 = arith.constant 0 : index
    %85 = vector.load %arg15[%c0_84, %c0_85] : memref<48x128xbf16, #tpu.memory_space<vmem>>, vector<16x128xbf16>
    tpu.vector_store %arg15[%c0_84, %c0_85], %84 {strides = array<i32>} : memref<48x128xbf16, #tpu.memory_space<vmem>>, vector<16x128xbf16>,
    %c16_86 = arith.constant 16 : index
    %c0_87 = arith.constant 0 : index
    %86 = vector.load %arg15[%c16_86, %c0_87] : memref<48x128xbf16, #tpu.memory_space<vmem>>, vector<32x128xbf16>
    tpu.vector_store %arg15[%c16_86, %c0_87], %83 {strides = array<i32>} : memref<48x128xbf16, #tpu.memory_space<vmem>>, vector<32x128xbf16>,
    %c0_88 = arith.constant 0 : index
    %c0_89 = arith.constant 0 : index
    %87 = vector.load %arg7[%c0_88, %c0_89] : memref<64x48xbf16, #tpu.memory_space<vmem>>, vector<64x48xbf16>
    %c0_90 = arith.constant 0 : index
    %c0_91 = arith.constant 0 : index
    %88 = vector.load %arg15[%c0_90, %c0_91] : memref<48x128xbf16, #tpu.memory_space<vmem>>, vector<48x128xbf16>
    %cst_92 = arith.constant dense<0.000000e+00> : vector<64x128xf32>
    %89 = tpu.matmul %87, %88, %cst_92 {dimension_numbers = #tpu.dot_dimension_numbers<[1], [0], [0], [1], [0, 0, 1, 1], [], []>} : vector<64x48xbf16>, vector<48x128xbf16>, vector<64x128xf32> -> vector<64x128xf32>
    %c0_93 = arith.constant 0 : index
    %c0_94 = arith.constant 0 : index
    %90 = vector.load %arg8[%c0_93, %c0_94] : memref<64x1xf32, #tpu.memory_space<vmem>>, vector<64x1xf32>
    %91 = vector.broadcast %90 : vector<64x1xf32> to vector<64x128xf32>
    %92 = arith.addf %89, %91 : vector<64x128xf32>
    %cst_95 = arith.constant 0.000000e+00 : f32
    %93 = vector.broadcast %cst_95 : f32 to vector<64x128xf32>
    %94 = arith.maximumf %92, %93 : vector<64x128xf32>
    %95 = arith.truncf %94 : vector<64x128xf32> to vector<64x128xbf16>
    %c0_96 = arith.constant 0 : index
    %c0_97 = arith.constant 0 : index
    %c0_98 = arith.constant 0 : index
    %96 = vector.load %arg9[%c0_96, %c0_97, %c0_98] : memref<1x64x128xbf16, #tpu.memory_space<vmem>>, vector<1x64x128xbf16>
    %97 = vector.shape_cast %96 : vector<1x64x128xbf16> to vector<64x128xbf16>
    %98 = vector.shape_cast %95 : vector<64x128xbf16> to vector<1x64x128xbf16>
    tpu.vector_store %arg9[%c0_96, %c0_97, %c0_98], %98 {strides = array<i32>} : memref<1x64x128xbf16, #tpu.memory_space<vmem>>, vector<1x64x128xbf16>,
    return
  }
  func.func @transform_0(%arg0: i32) -> (i32, i32, i32) {
    %c0_i32 = arith.constant 0 : i32
    %c0_i32_0 = arith.constant 0 : i32
    %c0_i32_1 = arith.constant 0 : i32
    return %arg0, %c0_i32, %c0_i32_0 : i32, i32, i32
  }
  func.func @transform_1(%arg0: i32) -> (i32, i32) {
    %c0_i32 = arith.constant 0 : i32
    %c0_i32_0 = arith.constant 0 : i32
    %c0_i32_1 = arith.constant 0 : i32
    return %c0_i32, %c0_i32_0 : i32, i32
  }
  func.func @transform_2(%arg0: i32) -> (i32, i32) {
    %c0_i32 = arith.constant 0 : i32
    %c0_i32_0 = arith.constant 0 : i32
    %c0_i32_1 = arith.constant 0 : i32
    return %c0_i32, %c0_i32_0 : i32, i32
  }
  func.func @transform_3(%arg0: i32) -> (i32, i32) {
    %c0_i32 = arith.constant 0 : i32
    %c0_i32_0 = arith.constant 0 : i32
    %c0_i32_1 = arith.constant 0 : i32
    return %c0_i32, %c0_i32_0 : i32, i32
  }
  func.func @transform_4(%arg0: i32) -> (i32, i32) {
    %c0_i32 = arith.constant 0 : i32
    %c0_i32_0 = arith.constant 0 : i32
    %c0_i32_1 = arith.constant 0 : i32
    return %c0_i32, %c0_i32_0 : i32, i32
  }
  func.func @transform_5(%arg0: i32) -> (i32, i32) {
    %c0_i32 = arith.constant 0 : i32
    %c0_i32_0 = arith.constant 0 : i32
    %c0_i32_1 = arith.constant 0 : i32
    return %c0_i32, %c0_i32_0 : i32, i32
  }
  func.func @transform_6(%arg0: i32) -> (i32, i32) {
    %c0_i32 = arith.constant 0 : i32
    %c0_i32_0 = arith.constant 0 : i32
    %c0_i32_1 = arith.constant 0 : i32
    return %c0_i32, %c0_i32_0 : i32, i32
  }
  func.func @transform_7(%arg0: i32) -> (i32, i32) {
    %c0_i32 = arith.constant 0 : i32
    %c0_i32_0 = arith.constant 0 : i32
    %c0_i32_1 = arith.constant 0 : i32
    return %c0_i32, %c0_i32_0 : i32, i32
  }
  func.func @transform_8(%arg0: i32) -> (i32, i32, i32) {
    %c0_i32 = arith.constant 0 : i32
    %c0_i32_0 = arith.constant 0 : i32
    %c0_i32_1 = arith.constant 0 : i32
    return %arg0, %c0_i32, %c0_i32_0 : i32, i32, i32
  }
}

</mosaic_0001>

<bundles_post_ra>
// kernel: tpu_custom_call.1
= control target key start
LH: loop header
LB: loop body
LE: loop exit
PB: predicated region body
PF: predicated region fallthrough
CT: control target
= control target key end

     0   :  { %13 = vsyncpa [#allocation9], 0  ;;  %s2206_s0 = inlined_call_operand.hbm [shape: bf16[2,128,256], index: 0, kind: input, shape index: {}]   ;;  %s2207_s1 = inlined_call_operand.vmem [shape: f32[4,256], index: 1, kind: input, shape index: {}]   ;;  %s2208_s2 = inlined_call_operand.vmem [shape: bf16[16,32], index: 2, kind: input, shape index: {}]   ;;  %s2209_s3 = inlined_call_operand.vmem [shape: f32[16,1], index: 3, kind: input, shape index: {}]   ;;  %s2210_s4 = inlined_call_operand.vmem [shape: bf16[16,144], index: 4, kind: input, shape index: {}]   ;;  %s2211_s5 = inlined_call_operand.vmem [shape: f32[16,1], index: 5, kind: input, shape index: {}]   ;;  %s2212_s6 = inlined_call_operand.vmem [shape: bf16[64,48], index: 6, kind: input, shape index: {}]   ;;  %s2213_s7 = inlined_call_operand.vmem [shape: f32[64,1], index: 7, kind: input, shape index: {}]   ;;  %s2214_s8 = inlined_call_operand.hbm [shape: bf16[2,64,128], index: 8, kind: output, shape index: {}]  }
   0x1   :  { %15 = vsyncpa [#allocation9 + $0x1], 0 }
   0x2   :  { %16 = vsyncpa [#allocation10], 0 }
   0x3   :  { %18 = vsyncpa [#allocation10 + $0x1], 0  ;;  %s1854_s27 = smov 0   ;;  %s1856_s28 = smov 0  }
   0x4   :  { %s1858_s29 = smov 0   ;;  %s1860_s30 = smov 0  }
   0x5 LB: > { %s1875_s9 = sadd.s32 4294967295, %s1797_s30   ;;  %s1453_s10 = sadd.s32 4294967294, %s1797_s30   ;;  %s1797_s30 = sphi %s1860_s30, %s2231_s30   ;;  %s1793_s29 = sphi %s1858_s29, %s2230_s29   ;;  %s1789_s28 = sphi %s1856_s28, %s2229_s28   ;;  %s1785_s27 = sphi %s1854_s27, %s2228_s27  }
   0x6   : > { %s1879_s11 = sadd.s32 1, %s1797_s30   ;;  %s31_s12 = sadd.s32 1, %s1793_s29 }
   0x7   : > { %s28_s13 = ssub.s32 %s1797_s30, %s1879_s11  ;;  %p38_p0 = scmp.ne.s32.totalorder %s1793_s29, %s1789_s28 }
   0x8   : > { %p29_p1 = scmp.eq.s32.totalorder %s28_s13, 0  ;;  %p39_p2 = scmp.eq.s32.totalorder %s1797_s30, 0 }
   0x9   : > { %p44_p3 = scmp.ne.s32.totalorder %s1789_s28, %s1785_s27  ;;  %p45_p4 = scmp.eq.s32.totalorder %s1875_s9, 0 }
   0xa   : > { %s1891_s14 = scalar_select %p29_p1, %s1793_s29, %s31_s12  }
   0xb   : > { %p1893_p5 = por %p39_p2, %p38_p0  ;;  %p1897_p6 = por %p45_p4, %p44_p3 }
   0xc   : > { %2217 = sst [smem:[#allocation14_spill]] %s1891_s14  ;;  %p215_p7 = scmp.eq.s32.totalorder %s1875_s9, 1 }
   0xd   : > { %s2219_s16 = scalar_select %p1897_p6, 1, 0 }
   0xe   : > { %p221_p8 = scmp.eq.s32.totalorder %s1453_s10, 1  ;;  %p1616_p10 = scmp.lt.s32.totalorder %s1797_s30, 2 }
   0xf   : > { %p1904_p11 = por %p215_p7, %p38_p0  ;;  %s262_s19 = sand.u32 1, %s1793_s29  }
  0x10   : > { %p1908_p12 = por %p221_p8, %p44_p3  ;;  %s1535_s20 = sshll.u32 %s1797_s30, 11 }
  0x11   : > { %s2220_s17 = scalar_select %p1904_p11, 1, 0 }
  0x12   : > { %s2221_s18 = scalar_select %p1908_p12, 1, 0 }
  0x13   : > { %s1456_s21 = sshll.u32 %s262_s19, 7  ;;  %s1917_s24 = scalar_lea.hbm %s2206_s0, %s1535_s20 }
  0x14   : > { %s266_s25 = scalar_lea.vmem [#allocation8], %s1456_s21  ;;  %p1921_p13 = pnand %p1616_p10, %p1893_p5 }
  0x15   : > { %s273_s26 = sshll.u32 %s266_s25, 4  ;;  %s1927_s12 = scalar_lea.sflag [#allocation9], %s262_s19  ;;  %s1925_s26 = int_to_ptr.vmem [resolvable:$true] %s273_s26 }
  0x16   : > { %s1705_s13 = scalar_lea.hbm %s1917_s24, 2048  ;;  %p1707_p1 = pneg %p1921_p13 }
  0x17   : > { %p1706_p0 = scmp.ne.s32.totalorder %s1917_s24, %s1705_s13  ;;  %s1710_s21 = scalar_lea.hbm %s2206_s0, 4096 }
  0x18   : > { %p1711_p4 = scmp.lt.s32.totalorder %s1917_s24, %s2206_s0  ;;  %p1712_p5 = scmp.lt.s32.totalorder %s1710_s21, %s1705_s13 }
  0x19   : > { %p1708_p2 = pnand %p1707_p1, %p1706_p0 }
  0x1a   : > { %p1713_p7 = por %p1712_p5, %p1711_p4 }
  0x1b   : > { %p1709_p3 = pneg %p1708_p2 }
  0x1d   : > { %p1714_p8 = pnand %p1713_p7, %p1709_p3 }
  0x1f   : > { %1717 = shalt.err (!%p1714_p8)
}
  0x20   : > { %s1718_s19 = scalar_lea.vmem %s1925_s26, 2048  ;;  %s1799_s25 = smov [#allocation8]  }
  0x21   : > { %p1719_p10 = scmp.ne.s32.totalorder %s1925_s26, %s1718_s19  ;;  %s1723_s14 = sshll.u32 %s1799_s25, 4  ;;  %s1724_s14 = int_to_ptr.vmem [resolvable:$false] %s1723_s14 }
  0x22   : > { %s1725_s20 = scalar_lea.vmem %s1724_s14, 4096  ;;  %p1726_p2 = scmp.lt.s32.totalorder %s1925_s26, %s1724_s14 }
  0x23   : > { %p1721_p9 = pnand %p1719_p10, %p1707_p1  ;;  %p1727_p12 = scmp.lt.s32.totalorder %s1725_s20, %s1718_s19 }
  0x25   : > { %p1722_p0 = pneg %p1721_p9  ;;  %p1728_p11 = por %p1727_p12, %p1726_p2 }
  0x27   : > { %p1729_p6 = pnand %p1728_p11, %p1722_p0 }
  0x29   : > { %1732 = shalt.err (!%p1729_p6)
}
  0x2a   : > { %s1800_s13 = smov 128   ;;  %s1801_s22 = smov 8  }
  0x2b   : > { %1611 = dma.hbm_to_vmem [thread:$0]  (!%p1921_p13), %s1917_s24, 2048, %s1925_s26, %s1927_s12, %s1800_s13, %s1800_s13, %s1801_s22  }
  0x2c   : > { %p1459_p9 = scmp.ge.s32.totalorder %s1797_s30, 1  ;;  %p281_p1 = scmp.lt.s32.totalorder %s1797_s30, 3 }
  0x2e   : > { %p282_p3 = pnand %p1459_p9, %p281_p1 }
  0x2f   : > { %s1951_s14 = sand.u32 (!%p282_p3), 1, %s1789_s28   ;;  %p2223_p6 = scmp.ne.s32.totalorder (!%p282_p3), %s2219_s16, 0 }
  0x30   : > { %285 = sbr.rel (%p282_p3) target bundleno = 887 (0x377), region = 52  ;;  %s1460_s21 = sshll.u32 (!%p282_p3), %s1951_s14, 7 }
  0x31   : > { %s288_s15 = scalar_lea.sflag (!%p282_p3), [#allocation9], %s1951_s14  ;;  %s1955_s23 = scalar_lea.vmem (!%p282_p3), [#allocation8], %s1460_s21 }
  0x35   : > { %1776 = dma.done.wait (%p2223_p6), %s288_s15, 2048  }
  0x36   : > { %1778 = vsyncadd (%p2223_p6), %s288_s15, 4294965248  ;;  %v1802_v0 = vmov 0   ;;  %v1966_v1 = vld [vmem:[%s1955_s23 + $0x10] sm:$0xff]  ;;  %v1969_v2 = vld [vmem:[%s1955_s23 + $0x18] sm:$0xff]  ;;  %vm368_vm0 = vcmask 261120   ;;  %v421_v27 = vlaneseq  ;;  %s1803_s10 = smov 117  }
  0x37   : > { %404 = vmatprep.mubr.bf16.mxu1 %v1802_v0  ;;  %651 = vmatprep.mubr.bf16.mxu0 %v1802_v0  ;;  %v1972_v3 = vld [vmem:[%s1955_s23] sm:$0xff]  ;;  %v1466_v4 = vcombine.high %v1966_v1, %v1969_v2  ;;  %v1465_v5 = vcombine.low %v1966_v1, %v1969_v2  ;;  %v1979_v6 = vld [vmem:[%s1955_s23 + $0x8] sm:$0xff]  ;;  %v1667_v9 = vld [vmem:[%s1955_s23 + $0x34] ss:$8 sps:$4 sm:$0xff]   ;;  %s1804_s13 = smov 118   ;;  %s1805_s22 = smov 127  }
  0x38   : > { %1658 = vset.pattern.permute.xlu0 %v1802_v0  ;;  %1659 = vset.pattern.permute.xlu1 %v1802_v0  ;;  %v1464_v7 = vcombine.high %v1972_v3, %v1979_v6  ;;  %v1463_v8 = vcombine.low %v1972_v3, %v1979_v6  ;;  %v1671_v10 = vld [vmem:[%s1955_s23 + $0x54] ss:$8 sps:$4 sm:$0xff]   ;;  %v1673_v11 = vld [vmem:[%s1955_s23 + $0x50] ss:$8 sps:$4 sm:$0xff]   ;;  %v1670_v14 = vld [vmem:[%s1955_s23 + $0x24] ss:$8 sps:$4 sm:$0xff]  }
  0x39   : > { %384 = vmatprep.subr.bf16.mxu1 %v1466_v4  ;;  %v1664_v12 = vld [vmem:[%s2208_s2] sm:$0xff]   ;;  %631 = vmatprep.subr.bf16.mxu0 %v1671_v10  ;;  %v1678_v15 = vld [vmem:[%s1955_s23 + $0x44] ss:$8 sps:$4 sm:$0xff]   ;;  %v1680_v16 = vld [vmem:[%s1955_s23 + $0x40] ss:$8 sps:$4 sm:$0xff]   ;;  %v422_v29 = vshrl.u32 %v421_v27, 7 }
  0x3a   : > { %385 = vmatpush1.bf16.msra.mxu1 %v1465_v5  ;;  %v1665_v13 = vld [vmem:[%s1955_s23 + $0x30] ss:$8 sps:$4 sm:$0xff]   ;;  %632 = vmatpush1.bf16.msra.mxu0 %v1673_v11  ;;  %v1668_v17 = vld [vmem:[%s1955_s23 + $0x20] ss:$8 sps:$4 sm:$0xff]   ;;  %v1677_v20 = vld [vmem:[%s1955_s23 + $0x74] ss:$8 sps:$4 sm:$0xff]  }
  0x3b   : > { %386 = vmatprep.subr.bf16.mxu1 %v1464_v7  ;;  %633 = vmatprep.subr.bf16.mxu0 %v1678_v15  ;;  %v1684_v18 = vld [vmem:[%s2208_s2] sm:$0xff]   ;;  %v704_v22 = vld [vmem:[%s2209_s3 + $0x8] sm:$0xff]  ;;  %v1683_v24 = vld [vmem:[%s1955_s23 + $0x64] ss:$8 sps:$4 sm:$0xff]   ;;  %v2025_v34 = vsub.s32 0, %v422_v29  ;;  %v2029_v37 = vsub.s32 1, %v422_v29 }
  0x3c   : > { %v1674_v19 = vld [vmem:[%s2208_s2] sm:$0xff]   ;;  %v1681_v25 = vld [vmem:[%s1955_s23 + $0x60] ss:$8 sps:$4 sm:$0xff]   ;;  %vm1051_vm1 = vcmask 130048   ;;  %vm885_vm2 = vcmask 957440   ;;  %vm868_vm3 = vcmask 965632  }
  0x3d   : > { %v703_v21 = vld [vmem:[%s2209_s3] sm:$0xff]  ;;  %vm835_vm4 = vcmask 1039360   ;;  %vm1240_vm5 = vcmask 392192   ;;  %s1461_s12 = sshll.u32 %s1951_s14, 5  ;;  %s1554_s20 = sshll.u32 %s1875_s9, 9 }
  0x3e   : > { %387 = vmatpush1.bf16.msra.mxu1 %v1463_v8  ;;  %634 = vmatpush1.bf16.msra.mxu0 %v1680_v16  ;;  %v1675_v23 = vld [vmem:[%s1955_s23 + $0x70] ss:$8 sps:$4 sm:$0xff]   ;;  %s323_s19 = scalar_lea.vmem [#allocation11], %s1461_s12  ;;  %s2163_s21 = scalar_lea.hbm %s2214_s8, %s1554_s20 }
  0x3f   : > { %507 = vmatprep.subr.bf16.mxu1 %v1667_v9  ;;  %707 = vperm.xlu0 %1658, %v703_v21   ;;  %v1685_v26 = vld [vmem:[%s2208_s2] sm:$0xff]   ;;  %s1380_s25 = sshll.u32 %s323_s19, 4  ;;  %s1367_s15 = scalar_lea.sflag [#allocation10], %s1951_s14  ;;  %s2158_s25 = int_to_ptr.vmem [resolvable:$true] %s1380_s25 }
  0x40   : > { %583 = vperm.xlu1 %1659, %v703_v21   ;;  %1055 = vmatprep.subr.bf16.mxu0 %v1802_v0  ;;  %v1485_v33 = vld [vmem:[%s2207_s1 + $0x2] ss:$4 sm:$0x3]  ;;  %v1494_v4 = vld [vmem:[%s2207_s1 + $0x3] ss:$4 sm:$0x3] }
  0x41   : > { %1467 = vmatmul.mubr.msk.bf16.vlgmr.msra.gmra.mxu1 %vm368_vm0, %v1664_v12  ;;  %1484 = vmatmul.mubr.msk.bf16.vlgmr.msra.gmra.mxu0 %vm368_vm0, %v1684_v18  ;;  %v672_v40 = vrot.slane %v1485_v33, %v2025_v34  ;;  %v676_v46 = vrot.slane %v1485_v33, %v2029_v37  ;;  %v796_v16 = vrot.slane %v1494_v4, %v2025_v34  ;;  %s1733_s23 = scalar_lea.vmem %s2158_s25, 512  ;;  %p2224_p12 = scmp.ne.s32.totalorder %s2220_s17, 0 }
  0x42   : > { %508 = vmatpush1.bf16.msra.mxu1 %v1665_v13  ;;  %527 = vmatprep.mubr.bf16.mxu1 %v1802_v0  ;;  %v800_v18 = vrot.slane %v1494_v4, %v2029_v37  ;;  %p1734_p11 = scmp.ne.s32.totalorder %s2158_s25, %s1733_s23  ;;  %s1806_s9 = smov [#allocation11]  }
  0x43   : > { %509 = vmatprep.subr.bf16.mxu1 %v1670_v14  ;;  %712 = vperm.xlu0 %1658, %v704_v22   ;;  %v1476_v14 = vld [vmem:[%s2207_s1 + $0x1] ss:$4 sm:$0x3]  ;;  %s1737_s16 = sshll.u32 %s1806_s9, 4  ;;  %s1738_s16 = int_to_ptr.vmem [resolvable:$false] %s1737_s16 }
  0x44   : > { %588 = vperm.xlu1 %1659, %v704_v22   ;;  %v548_v29 = vrot.slane %v1476_v14, %v2025_v34  ;;  %p1735_p13 = pnand %p1734_p11, %p2224_p12  ;;  %p1740_p5 = scmp.lt.s32.totalorder %s2158_s25, %s1738_s16 }
  0x46   : > { %510 = vmatpush1.bf16.msra.mxu1 %v1668_v17  ;;  %p1736_p4 = pneg %p1735_p13 }
  0x47   : > { %755 = vmatprep.subr.bf16.mxu1 %v1677_v20  ;;  %459 = vperm.xlu0 %1658, %v703_v21   ;;  %v552_v20 = vrot.slane %v1476_v14, %v2029_v37 }
  0x48   : > { %464 = vperm.xlu1 %1659, %v704_v22  }
  0x49   : > { %1475 = vmatmul.mubr.msk.bf16.vlgmr.msra.gmra.mxu1 %vm368_vm0, %v1674_v19 }
  0x4a   : > { %756 = vmatpush1.bf16.msra.mxu1 %v1675_v23  ;;  %775 = vmatprep.mubr.bf16.mxu1 %v1802_v0 }
  0x4b   : > { %757 = vmatprep.subr.bf16.mxu1 %v1683_v24  ;;  %335 = vperm.xlu0 %1658, %v703_v21  }
  0x4c   : > { %340 = vperm.xlu1 %1659, %v704_v22  }
  0x4e   : > { %758 = vmatpush1.bf16.msra.mxu1 %v1681_v25 }
  0x51   : > { %1493 = vmatmul.mubr.msk.bf16.vlgmr.msra.gmra.mxu1 %vm368_vm0, %v1685_v26 }
  0xba   : > { %v708_v30 = vpop.permute.xlu0 %707 }
  0xbb   : > { %v584_v32 = vpop.permute.xlu1 %583 }
  0xbe   : > { %v713_v41 = vpop.permute.xlu0 %712 }
  0xbf   : > { %v589_v47 = vpop.permute.xlu1 %588 }
  0xc2   : > { %v460_v58 = vpop.permute.xlu0 %459 }
  0xc3   : > { %v465_v7 = vpop.permute.xlu1 %464 }
  0xc6   : > { %v336_v13 = vpop.permute.xlu0 %335 }
 0x101   : > { %v406_v28 = vpop.f32.mrf.mxu1  ;;  %v653_v36 = vpop.f32.mrf.mxu0 }
 0x102   : > { %v654_v39 = vadd.f32 %v653_v36, %v584_v32  ;;  %v407_v26 = vadd.f32 %v406_v28, %v336_v13 }
 0x103   : > { %v408_v31 = vpop.f32.mrf.mxu1  ;;  %v655_v42 = vpop.f32.mrf.mxu0 }
 0x104   : > { %v662_v44 = vmax.f32 %v654_v39, 0.0  ;;  %v656_v45 = vadd.f32 %v655_v42, %v584_v32  ;;  %v409_v19 = vadd.f32 %v408_v31, %v336_v13  ;;  %v341_v31 = vpop.permute.xlu1 %340  ;;  %v1161_v13 = vld [vmem:[%s2213_s7 + $0x38] sm:$0xff] }
 0x105   : > { %v2027_v35 = vpop.f32.mrf.mxu1  ;;  %v657_v48 = vpop.f32.mrf.mxu0 }
 0x106   : > { %v679_v50 = vmul.f32 %v672_v40, %v662_v44  ;;  %v663_v51 = vmax.f32 %v656_v45, 0.0  ;;  %v658_v52 = vadd.f32 %v657_v48, %v589_v47 }
 0x107   : > { %v2031_v38 = vpop.f32.mrf.mxu1  ;;  %v659_v53 = vpop.f32.mrf.mxu0 }
 0x108   : > { %v680_v55 = vmul.f32 %v676_v46, %v663_v51  ;;  %v664_v56 = vmax.f32 %v658_v52, 0.0  ;;  %v660_v57 = vadd.f32 %v659_v53, %v589_v47  ;;  %v413_v45 = vadd.f32 %v2031_v38, %v341_v31 }
 0x109   : > { %v529_v43 = vpop.f32.mrf.mxu1  ;;  %v411_v51 = vadd.f32 %v2027_v35, %v341_v31 }
 0x10a   : > { %v681_v60 = vmul.f32 %v672_v40, %v664_v56  ;;  %v665_v61 = vmax.f32 %v660_v57, 0.0  ;;  %v2035_v62 = vpack.c.bf16 %v680_v55, %v679_v50  ;;  %v530_v10 = vadd.f32 %v529_v43, %v460_v58 }
 0x10b   : > { %v531_v49 = vpop.f32.mrf.mxu1  ;;  %v416_v43 = vmax.f32 %v409_v19, 0.0  ;;  %v415_v50 = vmax.f32 %v407_v26, 0.0 }
 0x10c   : > { %v682_v5 = vmul.f32 %v676_v46, %v665_v61  ;;  %928 = vrot.lane.b32.xlu0 %v2035_v62, %s1803_s10  ;;  %v532_v8 = vadd.f32 %v531_v49, %v460_v58  ;;  %v538_v27 = vmax.f32 %v530_v10, 0.0  ;;  %v1154_v10 = vld [vmem:[%s2213_s7] sm:$0xff] }
 0x10d   : > { %v533_v54 = vpop.f32.mrf.mxu1 }
 0x10e   : > { %v2042_v12 = vpack.c.bf16 %v682_v5, %v681_v60  ;;  %v539_v22 = vmax.f32 %v532_v8, 0.0  ;;  %v534_v32 = vadd.f32 %v533_v54, %v465_v7  ;;  %v555_v52 = vmul.f32 %v548_v29, %v538_v27  ;;  %v976_v8 = vld [vmem:[%s2211_s5] sm:$0xff] }
 0x10f   : > { %v535_v59 = vpop.f32.mrf.mxu1 }
 0x110   : > { %930 = vrot.lane.b32.xlu1 %v2042_v12, %s1803_s10  ;;  %v536_v23 = vadd.f32 %v535_v59, %v465_v7  ;;  %v556_v28 = vmul.f32 %v552_v20, %v539_v22  ;;  %v540_v53 = vmax.f32 %v534_v32, 0.0  ;;  %v417_v59 = vmax.f32 %v411_v51, 0.0 }
 0x111   : > { %v777_v63 = vpop.f32.mrf.mxu1 }
 0x112   : > { %v778_v9 = vadd.f32 %v777_v63, %v708_v30  ;;  %v541_v46 = vmax.f32 %v536_v23, 0.0  ;;  %v1538_v57 = vpack.c.bf16 %v556_v28, %v555_v52  ;;  %v557_v60 = vmul.f32 %v548_v29, %v540_v53 }
 0x113   : > { %v779_v11 = vpop.f32.mrf.mxu1 }
 0x114   : > { %v786_v15 = vmax.f32 %v778_v9, 0.0  ;;  %v780_v17 = vadd.f32 %v779_v11, %v708_v30  ;;  %v419_v30 = vld [vmem:[%s2207_s1] ss:$4 sm:$0x3]  ;;  %v558_v56 = vmul.f32 %v552_v20, %v541_v46  ;;  %v977_v9 = vld [vmem:[%s2211_s5 + $0x8] sm:$0xff]  ;;  %v1156_v11 = vld [vmem:[%s2213_s7 + $0x10] sm:$0xff] }
 0x115   : > { %v781_v21 = vpop.f32.mrf.mxu1  ;;  %v428_v44 = vrot.slane %v419_v30, %v2029_v37  ;;  %v424_v49 = vrot.slane %v419_v30, %v2025_v34  ;;  %v418_v37 = vmax.f32 %v413_v45, 0.0 }
 0x116   : > { %v787_v24 = vmax.f32 %v780_v17, 0.0  ;;  %v782_v25 = vadd.f32 %v781_v21, %v713_v41  ;;  %v803_v36 = vmul.f32 %v796_v16, %v786_v15  ;;  %v1539_v35 = vpack.c.bf16 %v558_v56, %v557_v60 }
 0x117   : > { %v783_v33 = vpop.f32.mrf.mxu1  ;;  %v431_v58 = vmul.f32 %v424_v49, %v415_v50  ;;  %v434_v34 = vmul.f32 %v428_v44, %v418_v37  ;;  %v433_v4 = vmul.f32 %v424_v49, %v417_v59 }
 0x118   : > { %v804_v39 = vmul.f32 %v800_v18, %v787_v24  ;;  %v788_v40 = vmax.f32 %v782_v25, 0.0  ;;  %v784_v42 = vadd.f32 %v783_v33, %v713_v41  ;;  %v432_v41 = vmul.f32 %v428_v44, %v416_v43 }
 0x119   : > { %v1537_v5 = vpack.c.bf16 %v434_v34, %v433_v4 }
 0x11a   : > { %v1542_v47 = vpack.c.bf16 %v804_v39, %v803_v36  ;;  %v789_v48 = vmax.f32 %v784_v42, 0.0  ;;  %v805_v54 = vmul.f32 %v796_v16, %v788_v40  ;;  %v1536_v61 = vpack.c.bf16 %v432_v41, %v431_v58 }
 0x11c   : > { %819 = vst [vmem:[#allocation5] sm:$0xff] %v1542_v47  ;;  %v806_v55 = vmul.f32 %v800_v18, %v789_v48  ;;  %912 = vrot.lane.b32.xlu0 %v1542_v47, %s1804_s13 }
 0x11e   : > { %v1543_v38 = vpack.c.bf16 %v806_v55, %v805_v54 }
 0x120   : > { %820 = vst [vmem:[#allocation5 + $0x8] sm:$0xff] %v1543_v38  ;;  %914 = vrot.lane.b32.xlu1 %v1543_v38, %s1804_s13  ;;  %896 = vrot.lane.b32.xlu0 %v1538_v57, %s1803_s10 }
 0x123   : > { %v821_v63 = vld [vmem:[#allocation5] sm:$0xf] }
 0x124   : > { %823 = vst [vmem:[#allocation6] sm:$0xf] %v821_v63  ;;  %898 = vrot.lane.b32.xlu1 %v1539_v35, %s1803_s10  ;;  %879 = vrot.lane.b32.xlu0 %v1536_v61, %s1803_s10 }
 0x127   : > { %v822_v7 = vld [vmem:[#allocation5 + $0x8] sm:$0xf] }
 0x128   : > { %824 = vst [vmem:[#allocation6 + $0x4] sm:$0xf] %v822_v7  ;;  %881 = vrot.lane.b32.xlu1 %v1537_v5, %s1803_s10  ;;  %862 = vrot.lane.b32.xlu0 %v1538_v57, %s1804_s13 }
 0x12c   : > { %864 = vrot.lane.b32.xlu1 %v1539_v35, %s1804_s13  ;;  %846 = vrot.lane.b32.xlu0 %v1542_v47, %s1805_s22 }
 0x130   : > { %848 = vrot.lane.b32.xlu1 %v1543_v38, %s1805_s22  ;;  %829 = vrot.lane.b32.xlu0 %v2035_v62, %s1805_s22  ;;  %v1695_v62 = vld [vmem:[%s2210_s4 + $0x4] ss:$8 sps:$4 sm:$0xff]  }
 0x131   : > { %1508 = vmatprep.mubr.msk.bf16.mxu0 %vm1051_vm1, %v1695_v62 }
 0x134   : > { %831 = vrot.lane.b32.xlu1 %v2042_v12, %s1805_s22  ;;  %944 = vrot.lane.b32.xlu0 %v1542_v47, %s1803_s10  ;;  %v1160_v12 = vld [vmem:[%s2213_s7 + $0x30] sm:$0xff] }
 0x138   : > { %946 = vrot.lane.b32.xlu1 %v1543_v38, %s1803_s10  ;;  %980 = vperm.xlu0 %1658, %v976_v8  }
 0x13c   : > { %985 = vperm.xlu1 %1659, %v977_v9   ;;  %1120 = vrot.lane.b32.xlu0 %v1966_v1, %s1803_s10  ;;  %v1155_v1 = vld [vmem:[%s2213_s7 + $0x8] sm:$0xff] }
 0x140   : > { %1122 = vrot.lane.b32.xlu1 %v1969_v2, %s1803_s10  ;;  %1116 = vrot.lane.b32.xlu0 %v1972_v3, %s1803_s10  ;;  %v1157_v2 = vld [vmem:[%s2213_s7 + $0x18] sm:$0xff]  ;;  %v1158_v3 = vld [vmem:[%s2213_s7 + $0x20] sm:$0xff] }
 0x144   : > { %1118 = vrot.lane.b32.xlu1 %v1979_v6, %s1803_s10  ;;  %1164 = vperm.xlu0 %1658, %v1154_v10   ;;  %v1159_v6 = vld [vmem:[%s2213_s7 + $0x28] sm:$0xff]  ;;  %s1739_s10 = scalar_lea.vmem %s1738_s16, 1024 }
 0x145   : > { %p1741_p7 = scmp.lt.s32.totalorder %s1739_s10, %s1733_s23 }
 0x147   : > { %p1742_p8 = por %p1741_p7, %p1740_p5 }
 0x148   : > { %1169 = vperm.xlu1 %1659, %v1155_v1   ;;  %1174 = vperm.xlu0 %1658, %v1156_v11   ;;  %v1693_v1 = vld [vmem:[#allocation6] sm:$0xff]  }
 0x149   : > { %p1743_p10 = pnand %p1742_p8, %p1736_p4 }
 0x14c   : > { %1179 = vperm.xlu1 %1659, %v1157_v2   ;;  %1184 = vperm.xlu0 %1658, %v1158_v3  }
 0x150   : > { %1189 = vperm.xlu1 %1659, %v1159_v6   ;;  %1194 = vperm.xlu0 %1658, %v1160_v12  }
 0x154   : > { %1199 = vperm.xlu1 %1659, %v1161_v13   ;;  %v1697_v13 = vld [vmem:[%s2210_s4] ss:$8 sps:$4 sm:$0xff]  }
 0x17e   : > { %v929_v14 = vpop.permute.xlu0 %928 }
 0x17f   : > { %v932_v15 = vrot.slane %v929_v14, 4 }
 0x181   : > { %v934_v16 = vsel %vm885_vm2, %v929_v14, %v932_v15 }
 0x182   : > { %v931_v17 = vpop.permute.xlu1 %930  ;;  %938 = vst [vmem:[#allocation6 + $0x38] sm:$0xf] %v934_v16 }
 0x183   : > { %v933_v18 = vrot.slane %v931_v17, 4 }
 0x185   : > { %v935_v19 = vsel %vm885_vm2, %v931_v17, %v933_v18 }
 0x186   : > { %939 = vst [vmem:[#allocation6 + $0x3c] sm:$0xf] %v935_v19 }
 0x18d   : > { %v1686_v25 = vld [vmem:[#allocation6 + $0x38] sm:$0xff]  }
 0x18e   : > { %v913_v20 = vpop.permute.xlu0 %912  ;;  %1056 = vmatpush1.bf16.msra.mxu0 %v1686_v25 }
 0x18f   : > { %v916_v21 = vrot.slane %v913_v20, 4  ;;  %1057 = vmatprep.subr.bf16.mxu0 %v1802_v0 }
 0x191   : > { %v918_v22 = vsel %vm868_vm3, %v913_v20, %v916_v21 }
 0x192   : > { %922 = vst [vmem:[#allocation6 + $0x30] sm:$0xf] %v918_v22  ;;  %v915_v23 = vpop.permute.xlu1 %914  ;;  %v897_v24 = vpop.permute.xlu0 %896 }
 0x193   : > { %v917_v26 = vrot.slane %v915_v23, 4  ;;  %v900_v27 = vrot.slane %v897_v24, 4 }
 0x195   : > { %v919_v29 = vsel %vm868_vm3, %v915_v23, %v917_v26  ;;  %v902_v32 = vsel %vm885_vm2, %v897_v24, %v900_v27  ;;  %v1701_v24 = vld [vmem:[%s2212_s6] sm:$0xff]  }
 0x196   : > { %923 = vst [vmem:[#allocation6 + $0x34] sm:$0xf] %v919_v29  ;;  %906 = vst [vmem:[#allocation6 + $0x28] sm:$0xf] %v902_v32  ;;  %v899_v33 = vpop.permute.xlu1 %898  ;;  %v880_v30 = vpop.permute.xlu0 %879  ;;  %1596 = vmatprep.mubr.msk.bf16.mxu1 %vm1240_vm5, %v1701_v24 }
 0x197   : > { %v901_v31 = vrot.slane %v899_v33, 4  ;;  %v883_v36 = vrot.slane %v880_v30, 4 }
 0x199   : > { %v903_v39 = vsel %vm885_vm2, %v899_v33, %v901_v31  ;;  %v886_v40 = vsel %vm885_vm2, %v880_v30, %v883_v36 }
 0x19a   : > { %907 = vst [vmem:[#allocation6 + $0x2c] sm:$0xf] %v903_v39  ;;  %890 = vst [vmem:[#allocation6 + $0x20] sm:$0xf] %v886_v40  ;;  %v882_v42 = vpop.permute.xlu1 %881  ;;  %v863_v43 = vpop.permute.xlu0 %862  ;;  %v1702_v40 = vld [vmem:[%s2212_s6 + $0x8] sm:$0xff]  }
 0x19b   : > { %v884_v44 = vrot.slane %v882_v42, 4  ;;  %v866_v45 = vrot.slane %v863_v43, 4 }
 0x19d   : > { %v887_v28 = vsel %vm885_vm2, %v882_v42, %v884_v44  ;;  %v869_v46 = vsel %vm868_vm3, %v863_v43, %v866_v45  ;;  %v1687_v47 = vld [vmem:[#allocation6 + $0x30] sm:$0xff]   ;;  %v1703_v42 = vld [vmem:[%s2212_s6 + $0x10] sm:$0xff]   ;;  %v1704_v43 = vld [vmem:[%s2212_s6 + $0x18] sm:$0xff]  }
 0x19e   : > { %891 = vst [vmem:[#allocation6 + $0x24] sm:$0xf] %v887_v28  ;;  %873 = vst [vmem:[#allocation6 + $0x18] sm:$0xf] %v869_v46  ;;  %v865_v48 = vpop.permute.xlu1 %864  ;;  %v847_v49 = vpop.permute.xlu0 %846  ;;  %1058 = vmatpush1.bf16.msra.mxu0 %v1687_v47 }
 0x19f   : > { %v867_v50 = vrot.slane %v865_v48, 4  ;;  %v850_v51 = vrot.slane %v847_v49, 4  ;;  %1059 = vmatprep.subr.bf16.mxu0 %v1802_v0 }
 0x1a1   : > { %v870_v52 = vsel %vm868_vm3, %v865_v48, %v867_v50  ;;  %v852_v53 = vsel %vm835_vm4, %v847_v49, %v850_v51  ;;  %v1688_v54 = vld [vmem:[#allocation6 + $0x28] sm:$0xff]  }
 0x1a2   : > { %874 = vst [vmem:[#allocation6 + $0x1c] sm:$0xf] %v870_v52  ;;  %856 = vst [vmem:[#allocation6 + $0x10] sm:$0xf] %v852_v53  ;;  %v849_v55 = vpop.permute.xlu1 %848  ;;  %v830_v41 = vpop.permute.xlu0 %829  ;;  %1060 = vmatpush1.bf16.msra.mxu0 %v1688_v54 }
 0x1a3   : > { %v851_v37 = vrot.slane %v849_v55, 4  ;;  %v833_v56 = vrot.slane %v830_v41, 4  ;;  %1061 = vmatprep.subr.bf16.mxu0 %v1802_v0 }
 0x1a5   : > { %v853_v38 = vsel %vm835_vm4, %v849_v55, %v851_v37  ;;  %v836_v57 = vsel %vm835_vm4, %v830_v41, %v833_v56  ;;  %v1689_v58 = vld [vmem:[#allocation6 + $0x20] sm:$0xff]  }
 0x1a6   : > { %857 = vst [vmem:[#allocation6 + $0x14] sm:$0xf] %v853_v38  ;;  %840 = vst [vmem:[#allocation6 + $0x8] sm:$0xf] %v836_v57  ;;  %v832_v59 = vpop.permute.xlu1 %831  ;;  %v945_v60 = vpop.permute.xlu0 %944  ;;  %1062 = vmatpush1.bf16.msra.mxu0 %v1689_v58 }
 0x1a7   : > { %v834_v34 = vrot.slane %v832_v59, 4  ;;  %v948_v35 = vrot.slane %v945_v60, 4  ;;  %1063 = vmatprep.subr.bf16.mxu0 %v1802_v0 }
 0x1a9   : > { %v837_v61 = vsel %vm835_vm4, %v832_v59, %v834_v34  ;;  %v950_v63 = vsel %vm885_vm2, %v945_v60, %v948_v35  ;;  %v1690_v4 = vld [vmem:[#allocation6 + $0x18] sm:$0xff]  }
 0x1aa   : > { %841 = vst [vmem:[#allocation6 + $0xc] sm:$0xf] %v837_v61  ;;  %954 = vst [vmem:[#allocation6 + $0x40] sm:$0xf] %v950_v63  ;;  %v947_v5 = vpop.permute.xlu1 %946  ;;  %1064 = vmatpush1.bf16.msra.mxu0 %v1690_v4 }
 0x1ab   : > { %v949_v7 = vrot.slane %v947_v5, 4  ;;  %1065 = vmatprep.subr.bf16.mxu0 %v1802_v0 }
 0x1ad   : > { %v951_v8 = vsel %vm885_vm2, %v947_v5, %v949_v7  ;;  %v1691_v9 = vld [vmem:[#allocation6 + $0x10] sm:$0xff]  }
 0x1ae   : > { %955 = vst [vmem:[#allocation6 + $0x44] sm:$0xf] %v951_v8  ;;  %1066 = vmatpush1.bf16.msra.mxu0 %v1691_v9 }
 0x1af   : > { %1067 = vmatprep.subr.bf16.mxu0 %v1802_v0 }
 0x1b1   : > { %v1692_v62 = vld [vmem:[#allocation6 + $0x8] sm:$0xff]  }
 0x1b2   : > { %1068 = vmatpush1.bf16.msra.mxu0 %v1692_v62 }
 0x1b3   : > { %v981_v10 = vpop.permute.xlu0 %980  ;;  %1069 = vmatprep.subr.bf16.mxu0 %v1802_v0 }
 0x1b5   : > { %v1694_v6 = vld [vmem:[#allocation6 + $0x40] sm:$0xff]  }
 0x1b6   : > { %1070 = vmatpush1.bf16.msra.mxu0 %v1693_v1 }
 0x1b7   : > { %v986_v11 = vpop.permute.xlu1 %985  ;;  %v1121_v2 = vpop.permute.xlu0 %1120  ;;  %1085 = vmatprep.subr.bf16.mxu0 %v1802_v0 }
 0x1b8   : > { %v1126_v3 = vrot.slane %v1121_v2, 4 }
 0x1ba   : > { %v1130_v12 = vsel %vm885_vm2, %v1121_v2, %v1126_v3  ;;  %1086 = vmatpush2.bf16.msra.mxu0 %v1694_v6 }
 0x1bb   : > { %1138 = vst [vmem:[#allocation7 + $0x10] sm:$0xf] %v1130_v12  ;;  %v1123_v14 = vpop.permute.xlu1 %1122  ;;  %v1117_v15 = vpop.permute.xlu0 %1116 }
 0x1bc   : > { %v1127_v16 = vrot.slane %v1123_v14, 4  ;;  %v1124_v17 = vrot.slane %v1117_v15, 4 }
 0x1bd   : > { %1088 = vmatmul.mubr.bf16.vlgmr.msra.gmra.mxu0 %v1697_v13 }
 0x1be   : > { %v1131_v18 = vsel %vm885_vm2, %v1123_v14, %v1127_v16  ;;  %v1128_v19 = vsel %vm885_vm2, %v1117_v15, %v1124_v17 }
 0x1bf   : > { %1139 = vst [vmem:[#allocation7 + $0x14] sm:$0xf] %v1131_v18  ;;  %1136 = vst [vmem:[#allocation7 + $0x8] sm:$0xf] %v1128_v19  ;;  %v1119_v0 = vpop.permute.xlu1 %1118  ;;  %v1165_v44 = vpop.permute.xlu0 %1164 }
 0x1c0   : > { %v1125_v20 = vrot.slane %v1119_v0, 4 }
 0x1c2   : > { %v1129_v21 = vsel %vm885_vm2, %v1119_v0, %v1125_v20 }
 0x1c3   : > { %1137 = vst [vmem:[#allocation7 + $0xc] sm:$0xf] %v1129_v21  ;;  %v1170_v45 = vpop.permute.xlu1 %1169  ;;  %v1175_v28 = vpop.permute.xlu0 %1174 }
 0x1c6   : > { %v1698_v22 = vld [vmem:[#allocation7 + $0x10] sm:$0xff]  }
 0x1c7   : > { %1590 = vmatprep.subr.bf16.mxu1 %v1698_v22  ;;  %v1180_v46 = vpop.permute.xlu1 %1179  ;;  %v1185_v50 = vpop.permute.xlu0 %1184 }
 0x1c8   : > { %1591 = vmatpush3.bf16.msra.mxu1 %v1698_v22 }
 0x1ca   : > { %v1699_v23 = vld [vmem:[#allocation7 + $0x8] sm:$0xff]  }
 0x1cb   : > { %1592 = vmatprep.subr.bf16.mxu1 %v1699_v23  ;;  %v1190_v54 = vpop.permute.xlu1 %1189  ;;  %v1195_v60 = vpop.permute.xlu0 %1194 }
 0x1cc   : > { %1593 = vmatpush3.bf16.msra.mxu1 %v1699_v23 }
 0x1cf   : > { %v1200_v63 = vpop.permute.xlu1 %1199 }
 0x27d   : > { %v1089_v25 = vpop.f32.mrf.mxu0 }
 0x27e   : > { %v1090_v27 = vadd.f32 %v1089_v25, %v981_v10 }
 0x27f   : > { %v1091_v26 = vpop.f32.mrf.mxu0 }
 0x280   : > { %v1096_v30 = vmax.f32 %v1090_v27, 0.0 }
 0x281   : > { %v1092_v29 = vpop.f32.mrf.mxu0 }
 0x282   : > { %v1093_v32 = vadd.f32 %v1092_v29, %v986_v11 }
 0x283   : > { %v1094_v33 = vpop.f32.mrf.mxu0 }
 0x284   : > { %v1097_v31 = vmax.f32 %v1093_v32, 0.0 }
 0x286   : > { %v1558_v36 = vpack.c.bf16 %v1097_v31, %v1096_v30 }
 0x288   : > { %1559 = vst [vmem:[#allocation7] sm:$0xff] %v1558_v36  }
 0x28f   : > { %v1700_v39 = vld [vmem:[#allocation7] sm:$0xff]  }
 0x290   : > { %1594 = vmatprep.subr.bf16.mxu1 %v1700_v39 }
 0x291   : > { %1595 = vmatpush3.bf16.msra.mxu1 %v1700_v39 }
 0x294   : > { %1597 = vmatmul.mubr.msk.bf16.vlgmr.msra.gmra.mxu1 %vm1240_vm5, %v1702_v40 }
 0x295   : > { %1600 = vmatprep.mubr.msk.bf16.mxu1 %vm1240_vm5, %v1703_v42 }
 0x29c   : > { %1601 = vmatmul.mubr.msk.bf16.gmra.mxu1 %vm1240_vm5, %v1704_v43 }
 0x354   : > { %v1598_v47 = vpop.f32.mrf.mxu1 }
 0x355   : > { %v1296_v49 = vadd.f32 %v1598_v47, %v1175_v28 }
 0x356   : > { %v1287_v48 = vpop.f32.mrf.mxu1 }
 0x357   : > { %v1288_v52 = vadd.f32 %v1287_v48, %v1165_v44  ;;  %v1320_v41 = vmax.f32 %v1296_v49, 0.0 }
 0x358   : > { %v1599_v51 = vpop.f32.mrf.mxu1 }
 0x359   : > { %v1299_v53 = vadd.f32 %v1599_v51, %v1180_v46  ;;  %v1318_v57 = vmax.f32 %v1288_v52, 0.0 }
 0x35a   : > { %v1290_v55 = vpop.f32.mrf.mxu1 }
 0x35b   : > { %v1321_v37 = vmax.f32 %v1299_v53, 0.0  ;;  %v1291_v56 = vadd.f32 %v1290_v55, %v1170_v45 }
 0x35c   : > { %v1602_v38 = vpop.f32.mrf.mxu1 }
 0x35d   : > { %v1568_v58 = vpack.c.bf16 %v1321_v37, %v1320_v41  ;;  %v1319_v59 = vmax.f32 %v1291_v56, 0.0  ;;  %v1312_v61 = vadd.f32 %v1602_v38, %v1195_v60 }
 0x35e   : > { %v1303_v34 = vpop.f32.mrf.mxu1 }
 0x35f   : > { %1580 = vst [vmem:[%s323_s19 + $0x8] sm:$0xff] %v1568_v58   ;;  %v1563_v35 = vpack.c.bf16 %v1319_v59, %v1318_v57  ;;  %v1304_v5 = vadd.f32 %v1303_v34, %v1185_v50  ;;  %v1324_v9 = vmax.f32 %v1312_v61, 0.0 }
 0x360   : > { %v1603_v4 = vpop.f32.mrf.mxu1 }
 0x361   : > { %1564 = vst [vmem:[%s323_s19] sm:$0xff] %v1563_v35   ;;  %v1315_v7 = vadd.f32 %v1603_v4, %v1200_v63  ;;  %v1322_v1 = vmax.f32 %v1304_v5, 0.0 }
 0x362   : > { %v1306_v8 = vpop.f32.mrf.mxu1 }
 0x363   : > { %v1325_v62 = vmax.f32 %v1315_v7, 0.0  ;;  %v1307_v10 = vadd.f32 %v1306_v8, %v1190_v54 }
 0x365   : > { %v1578_v11 = vpack.c.bf16 %v1325_v62, %v1324_v9  ;;  %v1323_v2 = vmax.f32 %v1307_v10, 0.0 }
 0x367   : > { %1582 = vst [vmem:[%s323_s19 + $0x18] sm:$0xff] %v1578_v11   ;;  %v1573_v3 = vpack.c.bf16 %v1323_v2, %v1322_v1 }
 0x369   : > { %1581 = vst [vmem:[%s323_s19 + $0x10] sm:$0xff] %v1573_v3  }
 0x36a   : > { %1746 = shalt.err (!%p1743_p10)
}
 0x36b   : > { %s1747_s24 = scalar_lea.hbm %s2163_s21, 512  ;;  %s1751_s19 = scalar_lea.hbm %s2214_s8, 1024 }
 0x36c   : > { %p1748_p0 = scmp.ne.s32.totalorder %s2163_s21, %s1747_s24  ;;  %p1752_p1 = scmp.lt.s32.totalorder %s2163_s21, %s2214_s8 }
 0x36d   : > { %p1753_p3 = scmp.lt.s32.totalorder %s1751_s19, %s1747_s24 }
 0x36e   : > { %p1749_p2 = pnand %p1748_p0, %p2224_p12 }
 0x36f   : > { %p1754_p6 = por %p1753_p3, %p1752_p1 }
 0x370   : > { %p1750_p9 = pneg %p1749_p2 }
 0x372   : > { %p1755_p11 = pnand %p1754_p6, %p1750_p9 }
 0x374   : > { %1758 = shalt.err (!%p1755_p11)
}
 0x375   : > { %s1807_s22 = smov 64   ;;  %s1808_s23 = smov 4  }
 0x376   : > { %1606 = dma.vmem_to_hbm [thread:$0]  (%p2224_p12), %s2158_s25, 512, %s2163_s21, %s1367_s15, %s1807_s22, %s1807_s22, %s1808_s23  }
 0x377 PF: > { %s1395_s9 = sand.u32 1, %s1785_s27   ;;  %p2225_p13 = scmp.ne.s32.totalorder %s2221_s18, 0 }
 0x378   : > { %p2226_p4 = scmp.ge.s32.totalorder %s1797_s30, 2  ;;  %s1396_s16 = scalar_lea.sflag [#allocation10], %s1395_s9 }
 0x37a   : > { %p1613_p5 = pnand %p2226_p4, %p2225_p13 }
 0x37c   : > { %p1614_p7 = pneg %p1613_p5 }
 0x37e   : > { %1780 = dma.done.wait (%p1614_p7), %s1396_s16, 512  }
 0x37f   : > { %1782 = vsyncadd (%p1614_p7), %s1396_s16, 4294966784  ;;  %s2227_s10 = sld [smem:[#allocation14_spill]]  ;;  %p21_p8 = scmp.ge.s32.totalorder %s1879_s11, 4  }
 0x380   : > { %s2228_s27 = smov %s1789_s28  ;;  %s2229_s28 = smov %s1793_s29 }
 0x381   : > { %s2231_s30 = smov %s1879_s11  ;;  %23 = sbr.rel (!%p21_p8) target bundleno = 5 (0x5), region = 100 }
 0x385   : > { %s2230_s29 = smov %s2227_s10 }
 0x386   :  { %1401 = vsyncpa [#allocation9], 1 }
 0x387   :  { %1403 = vsyncpa [#allocation9 + $0x1], 1 }
 0x388   :  { %1404 = vsyncpa [#allocation10], 1 }
 0x389   :  { %1406 = vsyncpa [#allocation10 + $0x1], 1 }

</bundles_post_ra>
